<compile_context>
chip_gen: v5e
topology: v5e:2x2
jax: 0.10.0
libtpu: 0.0.40
codegen_flags: <defaults>
</compile_context>

<pallas_src>
import jax
import jax.numpy as jnp
import numpy as np
from jax.experimental import pallas as pl
from jax.experimental.pallas import tpu as pltpu


def _self_attention_kernel(xq_ref, x_ref, y_ref, wq_ref, bq_ref, wk_ref,
                           bk_ref, wv_ref, bv_ref, g_ref, o_ref):
    # xq_ref: (1, C, TQ) query tile of x     (f32)
    # x_ref : (1, C, HW) full x (value path) (f32)
    # y_ref : (1, C, HW) full y (key path)   (f32)
    # weights already bf16: wq/wk (Cq, C), wv (C, C); biases f32 (Co, 1)
    # g_ref : (1,) f32 scalar in SMEM
    xq = xq_ref[0]                                   # (C, TQ) f32
    xf = x_ref[0]                                    # (C, HW) f32
    yf = y_ref[0]                                    # (C, HW) f32

    xq_b = xq.astype(jnp.bfloat16)
    xf_b = xf.astype(jnp.bfloat16)
    yf_b = yf.astype(jnp.bfloat16)

    # 1x1 convs as channel matmuls, kept in (Cout, HW) orientation (lane-dense).
    q = jnp.dot(wq_ref[...], xq_b, preferred_element_type=jnp.float32) + bq_ref[...]   # (Cq, TQ)
    k = jnp.dot(wk_ref[...], yf_b, preferred_element_type=jnp.float32) + bk_ref[...]   # (Cq, HW)
    v = jnp.dot(wv_ref[...], xf_b, preferred_element_type=jnp.float32) + bv_ref[...]   # (C,  HW)

    # s[i, j] = sum_c q[c, i] * k[c, j]  -- contract channel dims directly,
    # no transposed copy of k is materialized.
    s = jax.lax.dot_general(
        q.astype(jnp.bfloat16), k.astype(jnp.bfloat16),
        dimension_numbers=(((0,), (0,)), ((), ())),
        preferred_element_type=jnp.float32)                     # (TQ, HW)

    # softmax over j, f32 elementwise; reciprocal goes to the EUP slot.
    m = jnp.max(s, axis=-1, keepdims=True)
    e = jnp.exp(s - m)
    p = e * pl.reciprocal(jnp.sum(e, axis=-1, keepdims=True), approx=True)  # (TQ, HW)

    # out[c, i] = sum_j v[c, j] * (1 - p[i, j]) = rowsum(v)[c] - (v p^T)[c, i]
    v_sum = jnp.sum(v, axis=-1, keepdims=True)                  # (C, 1)
    pv = jax.lax.dot_general(
        v.astype(jnp.bfloat16), p.astype(jnp.bfloat16),
        dimension_numbers=(((1,), (1,)), ((), ())),
        preferred_element_type=jnp.float32)                     # (C, TQ)
    out = v_sum - pv                                            # (C, TQ)

    # gamma * out + x  (residual uses the f32 query tile of x)
    o_ref[0] = g_ref[0] * out + xq


def _pick_tq(HW, tq=None):
    """Query-tile size along HW. Must be a multiple of 128 or the full HW."""
    if tq is not None:
        assert HW % tq == 0 and (tq % 128 == 0 or tq == HW)
        return tq
    # Conservative cap (sized for v7x's 64 MiB VMEM); raise on v5e/v6e for
    # fewer grid steps / bigger tiles if HW is large.
    for cand in (512, 256, 128):
        if cand <= HW and HW % cand == 0:
            return cand
    return HW  # small spatial size: single full-extent block is allowed


def self_attention_pallas(x_nchw, y_nchw, params, *, tq=None):
    B, C, H, W = x_nchw.shape
    HW = H * W
    Cq = C // 8

    # Flatten spatial dims only: keep channel-major (B, C, HW). No transposes.
    x = x_nchw.reshape(B, C, HW).astype(jnp.float32)
    y = y_nchw.reshape(B, C, HW).astype(jnp.float32)

    TQ = _pick_tq(HW, tq)
    n_q = HW // TQ

    # Weights cast to bf16 once (MXU-native); biases / gamma stay f32.
    wq = params["wq"].astype(jnp.bfloat16)            # (Cq, C)
    wk = params["wk"].astype(jnp.bfloat16)            # (Cq, C)
    wv = params["wv"].astype(jnp.bfloat16)            # (C, C)
    bq = params["bq"].reshape(Cq, 1).astype(jnp.float32)
    bk = params["bk"].reshape(Cq, 1).astype(jnp.float32)
    bv = params["bv"].reshape(C, 1).astype(jnp.float32)
    gamma = params["gamma"].reshape(1).astype(jnp.float32)

    full2d = lambda shape: pl.BlockSpec(shape, lambda b, qi: (0, 0))

    out = pl.pallas_call(
        _self_attention_kernel,
        out_shape=jax.ShapeDtypeStruct((B, C, HW), jnp.float32),
        grid_spec=pltpu.PrefetchScalarGridSpec(
            num_scalar_prefetch=0,
            grid=(B, n_q),
            in_specs=[
                pl.BlockSpec((1, C, TQ), lambda b, qi: (b, 0, qi)),  # x query tile
                pl.BlockSpec((1, C, HW), lambda b, qi: (b, 0, 0)),   # x full (value)
                pl.BlockSpec((1, C, HW), lambda b, qi: (b, 0, 0)),   # y full (key)
                full2d((Cq, C)),                                      # Wq
                full2d((Cq, 1)),                                      # bq
                full2d((Cq, C)),                                      # Wk
                full2d((Cq, 1)),                                      # bk
                full2d((C, C)),                                       # Wv
                full2d((C, 1)),                                       # bv
                pl.BlockSpec(memory_space=pltpu.MemorySpace.SMEM),    # gamma scalar
            ],
            out_specs=pl.BlockSpec((1, C, TQ), lambda b, qi: (b, 0, qi)),
        ),
        compiler_params=pltpu.CompilerParams(
            dimension_semantics=("parallel", "parallel")),
    )(x, x, y, wq, bq, wk, bk, wv, bv, gamma)

    # (B, C, HW) -> NCHW is a pure reshape (no transpose).
    return out.reshape(B, C, H, W)


def self_attention_ref(x_nchw, y_nchw, params):
    """Pure-JAX f32 reference replicating the PyTorch forward exactly."""
    B, C, H, W = x_nchw.shape
    HW = H * W
    x = x_nchw.reshape(B, C, HW).astype(jnp.float32)
    y = y_nchw.reshape(B, C, HW).astype(jnp.float32)
    q = jnp.einsum("oc,bcs->bos", params["wq"], x) + params["bq"][None, :, None]
    k = jnp.einsum("oc,bcs->bos", params["wk"], y) + params["bk"][None, :, None]
    v = jnp.einsum("oc,bcs->bos", params["wv"], x) + params["bv"][None, :, None]
    q = jnp.transpose(q, (0, 2, 1))                     # (B, HW, Cq)
    attn = jnp.einsum("bik,bkj->bij", q, k)             # (B, HW, HW)
    attn = 1.0 - jax.nn.softmax(attn, axis=-1)
    out = jnp.einsum("bcj,bij->bci", v, attn)           # (B, C, HW)
    out = out.reshape(B, C, H, W)
    return params["gamma"][0] * out + x_nchw.astype(jnp.float32)


def init_params(key, C):
    Cq = C // 8
    k = jax.random.split(key, 6)
    return {
        "wq": 0.1 * jax.random.normal(k[0], (Cq, C), jnp.float32),
        "bq": 0.1 * jax.random.normal(k[1], (Cq,), jnp.float32),
        "wk": 0.1 * jax.random.normal(k[2], (Cq, C), jnp.float32),
        "bk": 0.1 * jax.random.normal(k[3], (Cq,), jnp.float32),
        "wv": 0.1 * jax.random.normal(k[4], (C, C), jnp.float32),
        "bv": 0.1 * jax.random.normal(k[5], (C,), jnp.float32),
        # PyTorch inits gamma to 0; use a nonzero value so the attention path
        # actually affects the output in this synthetic test.
        "gamma": jnp.asarray([0.5], jnp.float32),
    }


if __name__ == "__main__":
    B, C, H, W = 2, 16, 16, 16          # C divisible by 8 (query/key = C//8 channels)
    key = jax.random.PRNGKey(0)
    kx, ky, kp = jax.random.split(key, 3)
    x = jax.random.normal(kx, (B, C, H, W), jnp.float32)
    y = jax.random.normal(ky, (B, C, H, W), jnp.float32)
    params = init_params(kp, C)

    # tq=128 exercises the query-tiled grid (2 tiles per batch -> grid (2, 2)).
    out = jax.block_until_ready(self_attention_pallas(x, y, params, tq=128))
    ref = jax.block_until_ready(self_attention_ref(x, y, params))

    assert out.shape == (B, C, H, W)
    # bf16 MXU operands (f32 accumulation) -> tolerance loosened vs pure-f32.
    np.testing.assert_allclose(np.asarray(out), np.asarray(ref), atol=1e-1, rtol=2e-2)
    print("KERNEL_OK")
</pallas_src>

<mosaic_0001>
module attributes {stable_mosaic.version = 11 : i64} {
  func.func @_self_attention_kernel(%arg0: i32, %arg1: i32, %arg2: memref<1x16x128xf32, #tpu.memory_space<vmem>>, %arg3: memref<1x16x256xf32, #tpu.memory_space<vmem>>, %arg4: memref<1x16x256xf32, #tpu.memory_space<vmem>>, %arg5: memref<2x16xbf16, #tpu.memory_space<vmem>>, %arg6: memref<2x1xf32, #tpu.memory_space<vmem>>, %arg7: memref<2x16xbf16, #tpu.memory_space<vmem>>, %arg8: memref<2x1xf32, #tpu.memory_space<vmem>>, %arg9: memref<16x16xbf16, #tpu.memory_space<vmem>>, %arg10: memref<16x1xf32, #tpu.memory_space<vmem>>, %arg11: memref<1xf32, #tpu.memory_space<smem>>, %arg12: memref<1x16x128xf32, #tpu.memory_space<vmem>>) attributes {dimension_semantics = [#tpu.dimension_semantics<parallel>, #tpu.dimension_semantics<parallel>], iteration_bounds = array<i64: 2, 2>, scalar_prefetch = 0 : i64, scratch_operands = 0 : i64, tpu.core_type = #tpu.core_type<tc>, window_params = [{transform_indices = @transform_0, window_bounds = array<i64: 1, 16, 128>}, {transform_indices = @transform_1, window_bounds = array<i64: 1, 16, 256>}, {transform_indices = @transform_2, window_bounds = array<i64: 1, 16, 256>}, {pipeline_mode = #tpu.pipeline_mode<synchronous>, transform_indices = @transform_3, window_bounds = array<i64: 2, 16>}, {pipeline_mode = #tpu.pipeline_mode<synchronous>, transform_indices = @transform_4, window_bounds = array<i64: 2, 1>}, {pipeline_mode = #tpu.pipeline_mode<synchronous>, transform_indices = @transform_5, window_bounds = array<i64: 2, 16>}, {pipeline_mode = #tpu.pipeline_mode<synchronous>, transform_indices = @transform_6, window_bounds = array<i64: 2, 1>}, {pipeline_mode = #tpu.pipeline_mode<synchronous>, transform_indices = @transform_7, window_bounds = array<i64: 16, 16>}, {pipeline_mode = #tpu.pipeline_mode<synchronous>, transform_indices = @transform_8, window_bounds = array<i64: 16, 1>}, {transform_indices = @transform_9, window_bounds = array<i64: 1>}, {transform_indices = @transform_10, window_bounds = array<i64: 1, 16, 128>}]} {
    %c0 = arith.constant 0 : index
    %c0_0 = arith.constant 0 : index
    %c0_1 = arith.constant 0 : index
    %0 = vector.load %arg2[%c0, %c0_0, %c0_1] : memref<1x16x128xf32, #tpu.memory_space<vmem>>, vector<1x16x128xf32>
    %1 = vector.shape_cast %0 : vector<1x16x128xf32> to vector<16x128xf32>
    %c0_2 = arith.constant 0 : index
    %c0_3 = arith.constant 0 : index
    %c0_4 = arith.constant 0 : index
    %2 = vector.load %arg3[%c0_2, %c0_3, %c0_4] : memref<1x16x256xf32, #tpu.memory_space<vmem>>, vector<1x16x256xf32>
    %3 = vector.shape_cast %2 : vector<1x16x256xf32> to vector<16x256xf32>
    %c0_5 = arith.constant 0 : index
    %c0_6 = arith.constant 0 : index
    %c0_7 = arith.constant 0 : index
    %4 = vector.load %arg4[%c0_5, %c0_6, %c0_7] : memref<1x16x256xf32, #tpu.memory_space<vmem>>, vector<1x16x256xf32>
    %5 = vector.shape_cast %4 : vector<1x16x256xf32> to vector<16x256xf32>
    %6 = arith.truncf %1 : vector<16x128xf32> to vector<16x128xbf16>
    %7 = arith.truncf %3 : vector<16x256xf32> to vector<16x256xbf16>
    %8 = arith.truncf %5 : vector<16x256xf32> to vector<16x256xbf16>
    %c0_8 = arith.constant 0 : index
    %c0_9 = arith.constant 0 : index
    %9 = vector.load %arg5[%c0_8, %c0_9] : memref<2x16xbf16, #tpu.memory_space<vmem>>, vector<2x16xbf16>
    %cst = arith.constant dense<0.000000e+00> : vector<2x128xf32>
    %10 = tpu.matmul %9, %6, %cst {dimension_numbers = #tpu.dot_dimension_numbers<[1], [0], [0], [1], [0, 0, 1, 1], [], []>} : vector<2x16xbf16>, vector<16x128xbf16>, vector<2x128xf32> -> vector<2x128xf32>
    %c0_10 = arith.constant 0 : index
    %c0_11 = arith.constant 0 : index
    %11 = vector.load %arg6[%c0_10, %c0_11] : memref<2x1xf32, #tpu.memory_space<vmem>>, vector<2x1xf32>
    %12 = vector.broadcast %11 : vector<2x1xf32> to vector<2x128xf32>
    %13 = arith.addf %10, %12 : vector<2x128xf32>
    %c0_12 = arith.constant 0 : index
    %c0_13 = arith.constant 0 : index
    %14 = vector.load %arg7[%c0_12, %c0_13] : memref<2x16xbf16, #tpu.memory_space<vmem>>, vector<2x16xbf16>
    %cst_14 = arith.constant dense<0.000000e+00> : vector<2x256xf32>
    %15 = tpu.matmul %14, %8, %cst_14 {dimension_numbers = #tpu.dot_dimension_numbers<[1], [0], [0], [1], [0, 0, 1, 1], [], []>} : vector<2x16xbf16>, vector<16x256xbf16>, vector<2x256xf32> -> vector<2x256xf32>
    %c0_15 = arith.constant 0 : index
    %c0_16 = arith.constant 0 : index
    %16 = vector.load %arg8[%c0_15, %c0_16] : memref<2x1xf32, #tpu.memory_space<vmem>>, vector<2x1xf32>
    %17 = vector.broadcast %16 : vector<2x1xf32> to vector<2x256xf32>
    %18 = arith.addf %15, %17 : vector<2x256xf32>
    %c0_17 = arith.constant 0 : index
    %c0_18 = arith.constant 0 : index
    %19 = vector.load %arg9[%c0_17, %c0_18] : memref<16x16xbf16, #tpu.memory_space<vmem>>, vector<16x16xbf16>
    %cst_19 = arith.constant dense<0.000000e+00> : vector<16x256xf32>
    %20 = tpu.matmul %19, %7, %cst_19 {dimension_numbers = #tpu.dot_dimension_numbers<[1], [0], [0], [1], [0, 0, 1, 1], [], []>} : vector<16x16xbf16>, vector<16x256xbf16>, vector<16x256xf32> -> vector<16x256xf32>
    %c0_20 = arith.constant 0 : index
    %c0_21 = arith.constant 0 : index
    %21 = vector.load %arg10[%c0_20, %c0_21] : memref<16x1xf32, #tpu.memory_space<vmem>>, vector<16x1xf32>
    %22 = vector.broadcast %21 : vector<16x1xf32> to vector<16x256xf32>
    %23 = arith.addf %20, %22 : vector<16x256xf32>
    %24 = arith.truncf %13 : vector<2x128xf32> to vector<2x128xbf16>
    %25 = arith.truncf %18 : vector<2x256xf32> to vector<2x256xbf16>
    %cst_22 = arith.constant dense<0.000000e+00> : vector<128x256xf32>
    %26 = tpu.matmul %24, %25, %cst_22 {dimension_numbers = #tpu.dot_dimension_numbers<[0], [0], [1], [1], [0, 1, 1, 1], [], []>} : vector<2x128xbf16>, vector<2x256xbf16>, vector<128x256xf32> -> vector<128x256xf32>
    %cst_23 = arith.constant dense<0xFF800000> : vector<128xf32>
    %27 = vector.multi_reduction <maximumf>, %26, %cst_23 [1] : vector<128x256xf32> to vector<128xf32>
    %28 = vector.shape_cast %27 : vector<128xf32> to vector<128x1xf32>
    %29 = vector.broadcast %28 : vector<128x1xf32> to vector<128x256xf32>
    %30 = arith.subf %26, %29 : vector<128x256xf32>
    %31 = math.exp %30 : vector<128x256xf32>
    %cst_24 = arith.constant dense<0.000000e+00> : vector<128xf32>
    %32 = vector.multi_reduction <add>, %31, %cst_24 [1] : vector<128x256xf32> to vector<128xf32>
    %33 = vector.shape_cast %32 : vector<128xf32> to vector<128x1xf32>
    %34 = tpu.reciprocal %33 {approx = true} : vector<128x1xf32> -> vector<128x1xf32>
    %35 = vector.broadcast %34 : vector<128x1xf32> to vector<128x256xf32>
    %36 = arith.mulf %31, %35 : vector<128x256xf32>
    %cst_25 = arith.constant dense<0.000000e+00> : vector<16xf32>
    %37 = vector.multi_reduction <add>, %23, %cst_25 [1] : vector<16x256xf32> to vector<16xf32>
    %38 = vector.shape_cast %37 : vector<16xf32> to vector<16x1xf32>
    %39 = arith.truncf %23 : vector<16x256xf32> to vector<16x256xbf16>
    %40 = arith.truncf %36 : vector<128x256xf32> to vector<128x256xbf16>
    %cst_26 = arith.constant dense<0.000000e+00> : vector<16x128xf32>
    %41 = tpu.matmul %39, %40, %cst_26 {dimension_numbers = #tpu.dot_dimension_numbers<[1], [1], [0], [0], [0, 0, 1, 0], [], []>} : vector<16x256xbf16>, vector<128x256xbf16>, vector<16x128xf32> -> vector<16x128xf32>
    %42 = vector.broadcast %38 : vector<16x1xf32> to vector<16x128xf32>
    %43 = arith.subf %42, %41 : vector<16x128xf32>
    %c0_27 = arith.constant 0 : index
    %44 = memref.load %arg11[%c0_27] : memref<1xf32, #tpu.memory_space<smem>>
    %45 = vector.broadcast %44 : f32 to vector<16x128xf32>
    %46 = arith.mulf %45, %43 : vector<16x128xf32>
    %47 = arith.addf %46, %1 : vector<16x128xf32>
    %c0_28 = arith.constant 0 : index
    %c0_29 = arith.constant 0 : index
    %c0_30 = arith.constant 0 : index
    %48 = vector.load %arg12[%c0_28, %c0_29, %c0_30] : memref<1x16x128xf32, #tpu.memory_space<vmem>>, vector<1x16x128xf32>
    %49 = vector.shape_cast %48 : vector<1x16x128xf32> to vector<16x128xf32>
    %50 = vector.shape_cast %47 : vector<16x128xf32> to vector<1x16x128xf32>
    tpu.vector_store %arg12[%c0_28, %c0_29, %c0_30], %50 {strides = array<i32>} : memref<1x16x128xf32, #tpu.memory_space<vmem>>, vector<1x16x128xf32>,
    return
  }
  func.func @transform_0(%arg0: i32, %arg1: i32) -> (i32, i32, i32) {
    %c0_i32 = arith.constant 0 : i32
    %c0_i32_0 = arith.constant 0 : i32
    return %arg0, %c0_i32, %arg1 : i32, i32, i32
  }
  func.func @transform_1(%arg0: i32, %arg1: i32) -> (i32, i32, i32) {
    %c0_i32 = arith.constant 0 : i32
    %c0_i32_0 = arith.constant 0 : i32
    %c0_i32_1 = arith.constant 0 : i32
    return %arg0, %c0_i32, %c0_i32_0 : i32, i32, i32
  }
  func.func @transform_2(%arg0: i32, %arg1: i32) -> (i32, i32, i32) {
    %c0_i32 = arith.constant 0 : i32
    %c0_i32_0 = arith.constant 0 : i32
    %c0_i32_1 = arith.constant 0 : i32
    return %arg0, %c0_i32, %c0_i32_0 : i32, i32, i32
  }
  func.func @transform_3(%arg0: i32, %arg1: i32) -> (i32, i32) {
    %c0_i32 = arith.constant 0 : i32
    %c0_i32_0 = arith.constant 0 : i32
    %c0_i32_1 = arith.constant 0 : i32
    return %c0_i32, %c0_i32_0 : i32, i32
  }
  func.func @transform_4(%arg0: i32, %arg1: i32) -> (i32, i32) {
    %c0_i32 = arith.constant 0 : i32
    %c0_i32_0 = arith.constant 0 : i32
    %c0_i32_1 = arith.constant 0 : i32
    return %c0_i32, %c0_i32_0 : i32, i32
  }
  func.func @transform_5(%arg0: i32, %arg1: i32) -> (i32, i32) {
    %c0_i32 = arith.constant 0 : i32
    %c0_i32_0 = arith.constant 0 : i32
    %c0_i32_1 = arith.constant 0 : i32
    return %c0_i32, %c0_i32_0 : i32, i32
  }
  func.func @transform_6(%arg0: i32, %arg1: i32) -> (i32, i32) {
    %c0_i32 = arith.constant 0 : i32
    %c0_i32_0 = arith.constant 0 : i32
    %c0_i32_1 = arith.constant 0 : i32
    return %c0_i32, %c0_i32_0 : i32, i32
  }
  func.func @transform_7(%arg0: i32, %arg1: i32) -> (i32, i32) {
    %c0_i32 = arith.constant 0 : i32
    %c0_i32_0 = arith.constant 0 : i32
    %c0_i32_1 = arith.constant 0 : i32
    return %c0_i32, %c0_i32_0 : i32, i32
  }
  func.func @transform_8(%arg0: i32, %arg1: i32) -> (i32, i32) {
    %c0_i32 = arith.constant 0 : i32
    %c0_i32_0 = arith.constant 0 : i32
    %c0_i32_1 = arith.constant 0 : i32
    return %c0_i32, %c0_i32_0 : i32, i32
  }
  func.func @transform_9(%arg0: i32, %arg1: i32) -> i32 {
    %c0_i32 = arith.constant 0 : i32
    %c0_i32_0 = arith.constant 0 : i32
    return %c0_i32 : i32
  }
  func.func @transform_10(%arg0: i32, %arg1: i32) -> (i32, i32, i32) {
    %c0_i32 = arith.constant 0 : i32
    %c0_i32_0 = arith.constant 0 : i32
    return %arg0, %c0_i32, %arg1 : i32, i32, i32
  }
}

</mosaic_0001>

<bundles_post_ra>
// kernel: tpu_custom_call.1
= control target key start
LH: loop header
LB: loop body
LE: loop exit
PB: predicated region body
PF: predicated region fallthrough
CT: control target
= control target key end

     0   :  { %s2306_s0 = inlined_call_operand.hbm [shape: f32[2,16,256], index: 0, kind: input, shape index: {}]   ;;  %s2307_s1 = inlined_call_operand.hbm [shape: f32[2,16,256], index: 1, kind: input, shape index: {}]   ;;  %s2308_s2 = inlined_call_operand.hbm [shape: f32[2,16,256], index: 2, kind: input, shape index: {}]   ;;  %s2309_s3 = inlined_call_operand.vmem [shape: bf16[2,16], index: 3, kind: input, shape index: {}]   ;;  %s2310_s4 = inlined_call_operand.vmem [shape: f32[2,1], index: 4, kind: input, shape index: {}]   ;;  %s2311_s5 = inlined_call_operand.vmem [shape: bf16[2,16], index: 5, kind: input, shape index: {}]   ;;  %s2312_s6 = inlined_call_operand.vmem [shape: f32[2,1], index: 6, kind: input, shape index: {}]   ;;  %s2313_s7 = inlined_call_operand.vmem [shape: bf16[16,16], index: 7, kind: input, shape index: {}]   ;;  %s2314_s8 = inlined_call_operand.vmem [shape: f32[16,1], index: 8, kind: input, shape index: {}]   ;;  %s2315_s9 = inlined_call_operand.<no memory space> [shape: f32[1], index: 9, kind: input, shape index: {}]   ;;  %s2316_s10 = inlined_call_operand.hbm [shape: f32[2,16,256], index: 10, kind: output, shape index: {}]  }
   0x1   :  { %2333 = sst [smem:[#allocation24_spill]] %s2307_s1 }
   0x2   :  { %2334 = sst [smem:[#allocation25_spill]] %s2308_s2 }
   0x3   :  { %2335 = sst [smem:[#allocation26_spill]] %s2309_s3 }
   0x4   :  { %2336 = sst [smem:[#allocation27_spill]] %s2310_s4 }
   0x5   :  { %2337 = sst [smem:[#allocation28_spill]] %s2311_s5 }
   0x6   :  { %2338 = sst [smem:[#allocation29_spill]] %s2312_s6 }
   0x7   :  { %2339 = sst [smem:[#allocation30_spill]] %s2313_s7 }
   0x8   :  { %2340 = sst [smem:[#allocation31_spill]] %s2314_s8 }
   0x9   :  { %2341 = sst [smem:[#allocation32_spill]] %s2316_s10 }
   0xa   :  { %15 = sst [smem:[#allocation2]] %s2315_s9 }
   0xb   :  { %16 = vsyncpa [#allocation4], 0 }
   0xc   :  { %18 = vsyncpa [#allocation4 + $0x1], 0 }
   0xd   :  { %19 = vsyncpa [#allocation7], 0 }
   0xe   :  { %21 = vsyncpa [#allocation7 + $0x1], 0 }
   0xf   :  { %22 = vsyncpa [#allocation5], 0 }
  0x10   :  { %24 = vsyncpa [#allocation5 + $0x1], 0  ;;  %s1757_s15 = smov 0   ;;  %s1759_s16 = smov 0  }
  0x11   :  { %s1761_s17 = smov 0   ;;  %s1763_s18 = smov 0  }
  0x12   :  { %s1765_s19 = smov 0   ;;  %s1767_s20 = smov 0  }
  0x13   :  { %s1769_s21 = smov 0   ;;  %s1771_s9 = smov 0  }
  0x14   :  { %s1773_s22 = smov 0   ;;  %s1775_s23 = smov 0  }
  0x15   :  { %s1777_s24 = smov 0  }
  0x16 LB: > { %2342 = sst [smem:[#allocation13_spill]] %s1657_s17  ;;  %s1811_s25 = sadd.s32 4294967295, %s1689_s24   ;;  %s1689_s24 = sphi %s1777_s24, %s30_s24   ;;  %s1685_s23 = sphi %s1775_s23, %s2396_s23   ;;  %s1681_s22 = sphi %s1773_s22, %s2395_s22   ;;  %s1677_s9 = sphi %s1771_s9, %s2394_s9   ;;  %s1673_s21 = sphi %s1769_s21, %s2393_s21   ;;  %s1669_s20 = sphi %s1767_s20, %s2392_s20   ;;  %s1665_s19 = sphi %s1765_s19, %s2391_s19   ;;  %s1661_s18 = sphi %s1763_s18, %s2390_s18   ;;  %s1657_s17 = sphi %s1761_s17, %s2385_s17   ;;  %s1653_s16 = sphi %s1759_s16, %s2389_s16   ;;  %s1649_s15 = sphi %s1757_s15, %s2388_s15  }
  0x17   : > { %2343 = sst [smem:[#allocation14_spill]] %s1661_s18  ;;  %p59_p0 = scmp.eq.s32.totalorder %s1689_s24, 0 }
  0x18   : > { %2344 = sst [smem:[#allocation15_spill]] %s1673_s21  ;;  %p65_p1 = scmp.eq.s32.totalorder %s1811_s25, 0 }
  0x19   : > { %2345 = sst [smem:[#allocation16_spill]] %s1677_s9  ;;  %p84_p2 = scmp.ne.s32.totalorder %s1657_s17, %s1653_s16 }
  0x1a   : > { %p90_p3 = scmp.ne.s32.totalorder %s1653_s16, %s1649_s15  ;;  %p2322_p5 = scmp.lt.s32.totalorder %s1689_s24, 4 }
  0x1b   : > { %p1822_p4 = por %p84_p2, %p59_p0  ;;  %s359_s30 = sand.u32 1, %s1689_s24  }
  0x1c   : > { %p1829_p6 = por %p90_p3, %p65_p1  ;;  %s361_s11 = sand.u32 1, %s1657_s17  }
  0x1d   : > { %s1211_s12 = sshll.u32 %s361_s11, 5  ;;  %s1252_s13 = sshll.u32 %s1685_s23, 5 }
  0x1e   : > { %s2347_s29 = scalar_select %p1829_p6, 1, 0 }
  0x1f   : > { %s2349_s1 = sld [smem:[#allocation24_spill]]  ;;  %s363_s26 = scalar_lea.vmem [#allocation6], %s1211_s12 }
  0x20   : > { %2348 = sst [smem:[#allocation17_spill]] %s2347_s29  ;;  %s371_s10 = sshll.u32 %s363_s26, 4  ;;  %s372_s10 = int_to_ptr.vmem [resolvable:$true] %s371_s10 }
  0x21   : > { %p1843_p7 = pnand %p2322_p5, %p1822_p4  ;;  %s2351_s2 = sld [smem:[#allocation25_spill]] }
  0x22   : > { %s1850_s14 = scalar_lea.sflag [#allocation7], %s359_s30  ;;  %s2320_s26 = smov 256  }
  0x23   : > { %s2319_s28 = smov 16   ;;  %s385_s8 = scalar_lea.vmem [#allocation8], %s1211_s12 }
  0x24   : > { %s1858_s30 = sshll.u32 %s385_s8, 4  ;;  %p1217_p8 = scmp.ge.s32.totalorder %s1689_s24, 1 }
  0x25   : > { %s368_s15 = scalar_lea.hbm %s2349_s1, %s1252_s13  ;;  %2352 = sst [smem:[#allocation18_spill]] %s1858_s30 }
  0x26   : > { %s369_s21 = sshll.u32 %s368_s15, 4  ;;  %p401_p9 = scmp.lt.s32.totalorder %s1689_s24, 5  ;;  %s370_s21 = int_to_ptr.hbm [resolvable:$true] %s369_s21 }
  0x27   : > { %s390_s27 = scalar_lea.hbm %s2351_s2, %s1252_s13  ;;  %s51_s11 = sadd.s32 1, %s1669_s20 }
  0x28   : > { %1269 = dma.hbm_to_vmem [thread:$0]  (!%p1843_p7), %s370_s21, 512, %s372_s10, %s1850_s14, %s2320_s26, %s2320_s26, %s2319_s28  }
  0x29   : > { %s391_s15 = sshll.u32 %s390_s27, 4  ;;  %p1865_p10 = pnand %p1217_p8, %p401_p9  ;;  %s1860_s15 = int_to_ptr.hbm [resolvable:$true] %s391_s15 }
  0x2a   : > { %s1205_s10 = sadd.s32 4294967294, %s1689_s24   ;;  %s39_s21 = sadd.s32 1, %s1681_s22 }
  0x2b   : > { %p40_p11 = scmp.ge.s32.totalorder %s39_s21, 2  ;;  %p58_p12 = scmp.ne.s32.totalorder %s1669_s20, %s1665_s19 }
  0x2c   : > { %p64_p13 = scmp.ne.s32.totalorder %s1665_s19, %s1661_s18  ;;  %p289_p2 = scmp.eq.s32.totalorder %s1811_s25, 3 }
  0x2d   : > { %s2398_s21 = smov (%p40_p11, %s39_s21), 0  ;;  %s2355_s12 = sadd.s32 1, %s1685_s23 }
  0x2e   : > { %2354 = sst [smem:[#allocation19_spill]] %s2398_s21  ;;  %s2400_s12 = smov (!%p40_p11, %s2355_s12), %s1685_s23 }
  0x2f   : > { %s47_s27 = ssub.s32 %s1681_s22, %s2398_s21  ;;  %p1886_p3 = por %p59_p0, %p58_p12 }
  0x30   : > { %p44_p4 = scmp.ge.s32.totalorder %s2400_s12, 2  ;;  %p1892_p8 = por %p65_p1, %p64_p13 }
  0x31   : > { %p1896_p9 = por %p289_p2, %p58_p12  ;;  %p295_p11 = scmp.eq.s32.totalorder %s1205_s10, 3 }
  0x32   : > { %s2402_s12 = smov (%p44_p4, %s2400_s12), 0  ;;  %s336_s1 = sand.u32 1, %s1669_s20  }
  0x33   : > { %s2358_s26 = scalar_select %p1896_p9, 1, 0 }
  0x34   : > { %2360 = sst [smem:[#allocation21_spill]] %s2402_s12  ;;  %p1902_p5 = por %p295_p11, %p64_p13 }
  0x35   : > { %2359 = sst [smem:[#allocation20_spill]] %s2358_s26  ;;  %s46_s2 = ssub.s32 %s1685_s23, %s2402_s12 }
  0x36   : > { %s2361_s30 = scalar_select %p1902_p5, 1, 0 }
  0x37   : > { %s48_s21 = sor.u32 %s47_s27, %s46_s2  ;;  %p75_p0 = scmp.eq.s32.totalorder %s46_s2, 0 }
  0x38   : > { %2362 = sst [smem:[#allocation22_spill]] %s2361_s30  ;;  %p49_p1 = scmp.eq.s32.totalorder %s48_s21, 0 }
  0x39   : > { %s1208_s18 = sshll.u32 %s336_s1, 4  ;;  %s2363_s7 = sadd.s32 1, %s1657_s17 }
  0x3a   : > { %s1912_s6 = scalar_select %p75_p0, %s1657_s17, %s2363_s7  }
  0x3b   : > { %s2365_s10 = sld [smem:[#allocation18_spill]]  ;;  %s1209_s5 = sshll.u32 %s1685_s23, 2 }
  0x3c   : > { %2364 = sst [smem:[#allocation23_spill]] %s1912_s6  ;;  %s344_s3 = sadd.s32 %s1681_s22, %s1209_s5 }
  0x3d   : > { %s1915_s26 = scalar_select %p49_p1, %s1669_s20, %s51_s11  }
  0x3e   : > { %s340_s30 = scalar_lea.vmem [#allocation3], %s1208_s18  ;;  %s1210_s29 = sshll.u32 %s344_s3, 3 }
  0x3f   : > { %s349_s4 = sshll.u32 %s340_s30, 4  ;;  %s346_s2 = scalar_lea.hbm %s2306_s0, %s1210_s29  ;;  %s350_s4 = int_to_ptr.vmem [resolvable:$true] %s349_s4 }
  0x40   : > { %p2366_p12 = scmp.lt.s32.totalorder %s1689_s24, 4  ;;  %s347_s7 = sshll.u32 %s346_s2, 4  ;;  %s348_s7 = int_to_ptr.hbm [resolvable:$true] %s347_s7 }
  0x41   : > { %s337_s21 = scalar_lea.sflag [#allocation4], %s336_s1  ;;  %s1693_s6 = smov 128  }
  0x42   : > { %p1264_p13 = pnand %p2366_p12, %p1886_p3  ;;  %s1694_s17 = smov 8  }
  0x43   : > { %s2367_s11 = smov 256   ;;  %s2368_s5 = smov 16  }
  0x44   : > { %1266 = dma.hbm_to_vmem [thread:$0]  (!%p1264_p13), %s348_s7, 256, %s350_s4, %s337_s21, %s2367_s11, %s1693_s6, %s1694_s17  }
  0x45   : > { %s2369_s3 = int_to_ptr.vmem [resolvable:$true] %s2365_s10  ;;  %405 = sbr.rel (%p1865_p10) target bundleno = 1149 (0x47d), region = 60 }
  0x46   : > { %1272 = dma.hbm_to_vmem [thread:$0]  (!%p1843_p7), %s1860_s15, 512, %s2369_s3, %s1850_s14, %s2367_s11, %s2367_s11, %s2368_s5  }
  0x47   : > { %s1939_s18 = sand.u32 (!%p1865_p10), 1, %s1665_s19  }
  0x48   : > { %s1218_s1 = sshll.u32 (!%p1865_p10), %s1939_s18, 4  ;;  %s408_s29 = scalar_lea.sflag (!%p1865_p10), [#allocation4], %s1939_s18 }
  0x49   : > { %s411_s4 = scalar_lea.vmem (!%p1865_p10), [#allocation3], %s1218_s1 }
  0x4a   : > { %1636 = dma.done.wait (%p1892_p8), %s408_s29, 256  }
  0x4b   : > { %1638 = vsyncadd (%p1892_p8), %s408_s29, 4294967040  ;;  %s417_s17 = sand.u32 1, %s1811_s25   ;;  %s419_s9 = sand.u32 1, %s1653_s16  }
  0x4c   : > { %s1219_s14 = sshll.u32 %s419_s9, 5  ;;  %s418_s15 = scalar_lea.sflag [#allocation7], %s417_s17 }
  0x4d   : > { %s1951_s30 = scalar_lea.vmem [#allocation6], %s1219_s14 }
  0x4e   : > { %1640 = dma.done.wait (%p1829_p6), %s418_s15, 1024  }
  0x4f   : > { %1642 = vsyncadd (%p1829_p6), %s418_s15, 4294966272  ;;  %v1695_v0 = vmov 0   ;;  %v1957_v1 = vld [vmem:[%s411_s4] sm:$0xff]  ;;  %v1959_v2 = vld [vmem:[%s411_s4 + $0x8] sm:$0xff]  ;;  %s431_s28 = scalar_lea.vmem [#allocation8], %s1219_s14  ;;  %s2371_s12 = sld [smem:[#allocation27_spill]] }
  0x50   : > { %1375 = vset.pattern.permute.xlu0 %v1695_v0  ;;  %1376 = vset.pattern.permute.xlu2 %v1695_v0  ;;  %v486_v3 = vld [vmem:[%s431_s28] sm:$0xff]  ;;  %v490_v4 = vpack.c.bf16 %v1959_v2, %v1957_v1  ;;  %v488_v5 = vld [vmem:[%s431_s28 + $0x10] sm:$0xff]  ;;  %v487_v8 = vld [vmem:[%s431_s28 + $0x8] sm:$0xff]  ;;  %s2372_s27 = sld [smem:[#allocation26_spill]]  ;;  %vm502_vm0 = vcmask 130048   ;;  %vm649_vm1 = vcmask 1040384  }
  0x51   : > { %v493_v6 = vpack.c.bf16 %v488_v5, %v486_v3  ;;  %v489_v10 = vld [vmem:[%s431_s28 + $0x18] sm:$0xff]  ;;  %s2373_s21 = sld [smem:[#allocation28_spill]]  ;;  %vm624_vm2 = vcmask 15360  }
  0x52   : > { %513 = vmatpush.bf16.msra.mxu0 %v490_v4  ;;  %v494_v12 = vpack.c.bf16 %v489_v10, %v487_v8  ;;  %s2374_s3 = sld [smem:[#allocation29_spill]] }
  0x53   : > { %536 = vmatpush.bf16.msra.mxu3 %v493_v6  ;;  %s2375_s6 = sld [smem:[#allocation30_spill]] }
  0x54   : > { %s2376_s14 = sld [smem:[#allocation31_spill]] }
  0x55   : > { %v496_v7 = vld [vmem:[%s2371_s12] sm:$0x3]  ;;  %s2377_s28 = sld [smem:[#allocation16_spill]] }
  0x56   : > { %v495_v9 = vld [vmem:[%s2372_s27] sm:$0x1]  ;;  %499 = vperm.xlu0 %1375, %v496_v7   ;;  %549 = vmatpush.bf16.msrb.mxu0 %v494_v12  ;;  %s2378_s25 = sld [smem:[#allocation15_spill]]  ;;  %s478_s27 = scalar_lea.vmem [#allocation9], %s1218_s1 }
  0x57   : > { %v519_v11 = vld [vmem:[%s2373_s21] sm:$0x1]  ;;  %1222 = vmatmul.msk.bf16.vlgmr.msra.gmra.mxu0 %vm502_vm0, %v495_v9  ;;  %s1048_s13 = sld [smem:[#allocation2]]  ;;  %s1070_s29 = sshll.u32 %s478_s27, 4  ;;  %s1071_s29 = int_to_ptr.vmem [resolvable:$true] %s1070_s29 }
  0x58   : > { %1223 = vmatmul.msk.bf16.vlgmr.msra.gmra.mxu3 %vm502_vm0, %v519_v11  ;;  %v520_v13 = vld [vmem:[%s2374_s3] sm:$0x3]  ;;  %s2379_s21 = sld [smem:[#allocation32_spill]] }
  0x5b   : > { %s1248_s12 = sshll.u32 %s2377_s28, 2 }
  0x5c   : > { %s1067_s8 = sadd.s32 %s2378_s25, %s1248_s12 }
  0x5d   : > { %s1249_s10 = sshll.u32 %s1067_s8, 3 }
  0x5e   : > { %523 = vperm.xlu0 %1375, %v520_v13   ;;  %s2380_s11 = smov %s2379_s21  ;;  %s1069_s3 = scalar_lea.hbm %s2379_s21, %s1249_s10 }
  0x5f   : > { %s1072_s4 = sshll.u32 %s1069_s3, 4  ;;  %s1073_s4 = int_to_ptr.hbm [resolvable:$true] %s1072_s4 }
  0x60   : > { %s1577_s17 = sshra.s32 %s1073_s4, 4  ;;  %s1578_s17 = int_to_ptr.hbm [resolvable:$true] %s1577_s17 }
  0x61   : > { %s1579_s1 = scalar_lea.hbm %s1578_s17, 16  ;;  %p1584_p2 = scmp.lt.s32.totalorder %s1578_s17, %s2380_s11 }
  0x62   : > { %p1580_p6 = scmp.ne.s32.totalorder %s1578_s17, %s1579_s1 }
  0x64   : > { %p1581_p7 = pnand %p1580_p6, %p1896_p9 }
  0x66   : > { %p1582_p10 = pneg %p1581_p7 }
  0x67   : > { %1224 = vmatmul.msk.bf16.vlgmr.msrb.gmra.mxu0 %vm502_vm0, %v519_v11 }
  0xc8   : > { %v500_v14 = vpop.permute.xlu0 %499 }
  0xd0   : > { %v524_v18 = vpop.permute.xlu0 %523 }
  0xd4   : > { %v515_v15 = vpop.f32.mrf.mxu0 }
  0xd5   : > { %v516_v16 = vadd.f32 %v515_v15, %v500_v14 }
  0xd7   : > { %v605_v17 = vpack.c.bf16 %v516_v16, %v516_v16 }
  0xd9   : > { %608 = vxpose.xlu1.c.b16.start.end [1/1] (short) %v605_v17, 128 }
  0xdb   : > { %v538_v19 = vpop.f32.mrf.mxu3 }
  0xdc   : > { %v539_v20 = vadd.f32 %v538_v19, %v524_v18  ;;  %v517_v21 = vpop.f32.mrf.mxu0 }
  0xde   : > { %v606_v22 = vpack.c.bf16 %v539_v20, %v539_v20 }
  0xe0   : > { %v651_v23 = vsel %vm649_vm1, %v606_v22, 0 }
  0xe1   : > { %663 = vmatpush.bf16.msra.mxu1 %v651_v23 }
  0xe3   : > { %v540_v24 = vpop.f32.mrf.mxu3 }
  0xe4   : > { %v551_v25 = vpop.f32.mrf.mxu0 }
  0xe5   : > { %v552_v26 = vadd.f32 %v551_v25, %v524_v18 }
  0xe7   : > { %v607_v27 = vpack.c.bf16 %v552_v26, %v552_v26 }
  0xe9   : > { %v654_v28 = vsel %vm649_vm1, %v607_v27, 0 }
  0xea   : > { %712 = vmatpush.bf16.msra.mxu2 %v654_v28 }
  0xec   : > { %v553_v29 = vpop.f32.mrf.mxu0 }
 0x185   : > { %v616_v30 = vpop.trf.xlu1 }
 0x186   : > { %1231 = vmatmul.msk.bf16.vlgmr.msra.gmra.mxu1 %vm624_vm2, %v616_v30  ;;  %1239 = vmatmul.msk.bf16.vlgmr.msra.gmra.mxu2 %vm624_vm2, %v616_v30 }
 0x195   : > { %v617_v31 = vpop.trf.xlu1 }
 0x196   : > { %1232 = vmatmul.msk.bf16.gmra.mxu1 %vm624_vm2, %v617_v31  ;;  %1240 = vmatmul.msk.bf16.gmra.mxu2 %vm624_vm2, %v617_v31 }
 0x1a5   : > { %v618_v32 = vpop.trf.xlu1 }
 0x1a6   : > { %1233 = vmatmul.msk.bf16.gmra.mxu1 %vm624_vm2, %v618_v32  ;;  %1241 = vmatmul.msk.bf16.gmra.mxu2 %vm624_vm2, %v618_v32 }
 0x1b5   : > { %v619_v33 = vpop.trf.xlu1 }
 0x1b6   : > { %1234 = vmatmul.msk.bf16.gmra.mxu1 %vm624_vm2, %v619_v33  ;;  %1242 = vmatmul.msk.bf16.gmra.mxu2 %vm624_vm2, %v619_v33 }
 0x1c5   : > { %v620_v34 = vpop.trf.xlu1 }
 0x1c6   : > { %1235 = vmatmul.msk.bf16.gmra.mxu1 %vm624_vm2, %v620_v34  ;;  %1243 = vmatmul.msk.bf16.gmra.mxu2 %vm624_vm2, %v620_v34 }
 0x1d5   : > { %v621_v35 = vpop.trf.xlu1 }
 0x1d6   : > { %1236 = vmatmul.msk.bf16.gmra.mxu1 %vm624_vm2, %v621_v35  ;;  %1244 = vmatmul.msk.bf16.gmra.mxu2 %vm624_vm2, %v621_v35 }
 0x1e5   : > { %v622_v36 = vpop.trf.xlu1 }
 0x1e6   : > { %1237 = vmatmul.msk.bf16.gmra.mxu1 %vm624_vm2, %v622_v36  ;;  %1245 = vmatmul.msk.bf16.gmra.mxu2 %vm624_vm2, %v622_v36 }
 0x1f5   : > { %v623_v37 = vpop.trf.xlu1 }
 0x1f6   : > { %1246 = vmatmul.msk.bf16.gmra.mxu2 %vm624_vm2, %v623_v37  ;;  %1238 = vmatmul.msk.bf16.gmra.mxu1 %vm624_vm2, %v623_v37 }
 0x203   : > { %v1994_v38 = vpop.f32.mrf.mxu1 }
 0x209   : > { %v1996_v39 = vpop.f32.mrf.mxu2 }
 0x20a   : > { %v754_v15 = vmax.f32 %v1994_v38, %v1996_v39 }
 0x20b   : > { %v1998_v40 = vpop.f32.mrf.mxu1 }
 0x211   : > { %v2000_v41 = vpop.f32.mrf.mxu2 }
 0x212   : > { %v757_v23 = vmax.f32 %v1998_v40, %v2000_v41 }
 0x213   : > { %v2002_v42 = vpop.f32.mrf.mxu1 }
 0x219   : > { %v2004_v43 = vpop.f32.mrf.mxu2 }
 0x21a   : > { %v760_v13 = vmax.f32 %v2002_v42, %v2004_v43 }
 0x21b   : > { %v2006_v44 = vpop.f32.mrf.mxu1 }
 0x221   : > { %v2008_v45 = vpop.f32.mrf.mxu2 }
 0x222   : > { %v763_v22 = vmax.f32 %v2006_v44, %v2008_v45 }
 0x223   : > { %v2010_v46 = vpop.f32.mrf.mxu1 }
 0x229   : > { %v2012_v47 = vpop.f32.mrf.mxu2 }
 0x22a   : > { %v766_v10 = vmax.f32 %v2010_v46, %v2012_v47 }
 0x22b   : > { %v2014_v48 = vpop.f32.mrf.mxu1 }
 0x231   : > { %v2016_v49 = vpop.f32.mrf.mxu2 }
 0x232   : > { %v769_v21 = vmax.f32 %v2014_v48, %v2016_v49 }
 0x233   : > { %v2018_v50 = vpop.f32.mrf.mxu1 }
 0x239   : > { %v2020_v51 = vpop.f32.mrf.mxu2 }
 0x23a   : > { %v772_v16 = vmax.f32 %v2018_v50, %v2020_v51 }
 0x23b   : > { %v2022_v52 = vpop.f32.mrf.mxu1 }
 0x241   : > { %v2024_v53 = vpop.f32.mrf.mxu2 }
 0x242   : > { %v775_v17 = vmax.f32 %v2022_v52, %v2024_v53 }
 0x243   : > { %v685_v54 = vpop.f32.mrf.mxu1 }
 0x249   : > { %v734_v55 = vpop.f32.mrf.mxu2 }
 0x24a   : > { %v778_v12 = vmax.f32 %v685_v54, %v734_v55 }
 0x24b   : > { %v2026_v56 = vpop.f32.mrf.mxu1 }
 0x251   : > { %v2028_v57 = vpop.f32.mrf.mxu2 }
 0x252   : > { %v781_v14 = vmax.f32 %v2026_v56, %v2028_v57 }
 0x253   : > { %v690_v58 = vpop.f32.mrf.mxu1 }
 0x259   : > { %v739_v59 = vpop.f32.mrf.mxu2 }
 0x25a   : > { %v784_v5 = vmax.f32 %v690_v58, %v739_v59 }
 0x25b   : > { %v2030_v60 = vpop.f32.mrf.mxu1 }
 0x261   : > { %v2032_v61 = vpop.f32.mrf.mxu2 }
 0x262   : > { %v787_v9 = vmax.f32 %v2030_v60, %v2032_v61 }
 0x263   : > { %v2034_v62 = vpop.f32.mrf.mxu1 }
 0x269   : > { %v2036_v63 = vpop.f32.mrf.mxu2 }
 0x26a   : > { %v790_v0 = vmax.f32 %v2034_v62, %v2036_v63 }
 0x26b   : > { %v2040_v3 = vpop.f32.mrf.mxu1 }
 0x26c   : > { %791 = vmax.xlane.f32.xlu2 %v790_v0 }
 0x271   : > { %v2042_v4 = vpop.f32.mrf.mxu2 }
 0x272   : > { %v793_v6 = vmax.f32 %v2040_v3, %v2042_v4 }
 0x273   : > { %v2046_v7 = vpop.f32.mrf.mxu1 }
 0x274   : > { %785 = vmax.xlane.f32.xlu2 %v784_v5  ;;  %794 = vmax.xlane.f32.xlu0 %v793_v6 }
 0x279   : > { %v2048_v8 = vpop.f32.mrf.mxu2 }
 0x27a   : > { %v796_v11 = vmax.f32 %v2046_v7, %v2048_v8 }
 0x27b   : > { %v2066_v18 = vpop.f32.mrf.mxu1 }
 0x27c   : > { %788 = vmax.xlane.f32.xlu2 %v787_v9  ;;  %767 = vmax.xlane.f32.xlu0 %v766_v10 }
 0x27d   : > { %797 = vmax.xlane.f32.xlu1 %v796_v11 }
 0x281   : > { %v2068_v19 = vpop.f32.mrf.mxu2 }
 0x282   : > { %v799_v20 = vmax.f32 %v2066_v18, %v2068_v19 }
 0x284   : > { %779 = vmax.xlane.f32.xlu2 %v778_v12  ;;  %761 = vmax.xlane.f32.xlu0 %v760_v13 }
 0x28c   : > { %782 = vmax.xlane.f32.xlu2 %v781_v14  ;;  %755 = vmax.xlane.f32.xlu0 %v754_v15 }
 0x294   : > { %773 = vmax.xlane.f32.xlu2 %v772_v16 }
 0x29c   : > { %776 = vmax.xlane.f32.xlu2 %v775_v17 }
 0x2a4   : > { %800 = vmax.xlane.f32.xlu2 %v799_v20 }
 0x2ac   : > { %770 = vmax.xlane.f32.xlu2 %v769_v21 }
 0x2b4   : > { %764 = vmax.xlane.f32.xlu2 %v763_v22 }
 0x2bc   : > { %758 = vmax.xlane.f32.xlu2 %v757_v23 }
 0x2df   : > { %v792_v24 = vpop.xlane.xlu2 %791 }
 0x2e0   : > { %v826_v37 = vsub.f32 %v2034_v62, %v792_v24  ;;  %v827_v6 = vsub.f32 %v2036_v63, %v792_v24 }
 0x2e2   : > { %v882_v11 = vmul.f32 1.442695, %v826_v37 }
 0x2e7   : > { %v786_v25 = vpop.xlane.xlu2 %785  ;;  %v795_v62 = vpop.xlane.xlu0 %794 }
 0x2e8   : > { %v822_v30 = vsub.f32 %v690_v58, %v786_v25  ;;  %v823_v33 = vsub.f32 %v739_v59, %v786_v25  ;;  %v828_v15 = vsub.f32 %v2040_v3, %v795_v62 }
 0x2ea   : > { %v874_v34 = vmul.f32 1.442695, %v822_v30  ;;  %v876_v35 = vmul.f32 1.442695, %v823_v33  ;;  %v886_v23 = vmul.f32 1.442695, %v828_v15 }
 0x2ef   : > { %v789_v26 = vpop.xlane.xlu2 %788  ;;  %v768_v30 = vpop.xlane.xlu0 %767 }
 0x2f0   : > { %v825_v10 = vsub.f32 %v2032_v61, %v789_v26  ;;  %v798_v13 = vpop.xlane.xlu1 %797  ;;  %v829_v61 = vsub.f32 %v2042_v4, %v795_v62 }
 0x2f1   : > { %v830_v20 = vsub.f32 %v2046_v7, %v798_v13  ;;  %v831_v22 = vsub.f32 %v2048_v8, %v798_v13 }
 0x2f2   : > { %v880_v12 = vmul.f32 1.442695, %v825_v10  ;;  %v888_v25 = vmul.f32 1.442695, %v829_v61 }
 0x2f3   : > { %v890_v4 = vmul.f32 1.442695, %v830_v20 }
 0x2f7   : > { %v780_v27 = vpop.xlane.xlu2 %779  ;;  %v762_v61 = vpop.xlane.xlu0 %761 }
 0x2f8   : > { %v818_v28 = vsub.f32 %v685_v54, %v780_v27  ;;  %v819_v29 = vsub.f32 %v734_v55, %v780_v27  ;;  %v824_v54 = vsub.f32 %v2030_v60, %v789_v26  ;;  %v892_v27 = vmul.f32 1.442695, %v831_v22 }
 0x2fa   : > { %v866_v31 = vmul.f32 1.442695, %v818_v28  ;;  %v868_v32 = vmul.f32 1.442695, %v819_v29  ;;  %v878_v63 = vmul.f32 1.442695, %v824_v54 }
 0x2fb   : > { %v485_v54 = vld [vmem:[%s1951_s30 + $0x18] sm:$0xff] }
 0x2fc   : > { %1377 = vpow2.f32 %v866_v31 }
 0x2fd   : > { %1379 = vpow2.f32 %v868_v32 }
 0x2fe   : > { %1381 = vpow2.f32 %v874_v34 }
 0x2ff   : > { %v783_v36 = vpop.xlane.xlu2 %782  ;;  %1383 = vpow2.f32 %v876_v35  ;;  %v482_v35 = vld [vmem:[%s1951_s30] sm:$0xff] }
 0x300   : > { %v820_v0 = vsub.f32 %v2026_v56, %v783_v36  ;;  %v821_v5 = vsub.f32 %v2028_v57, %v783_v36  ;;  %v884_v57 = vmul.f32 1.442695, %v827_v6  ;;  %v484_v36 = vld [vmem:[%s1951_s30 + $0x10] sm:$0xff]  ;;  %v483_v6 = vld [vmem:[%s1951_s30 + $0x8] sm:$0xff]  ;;  %s1583_s30 = scalar_lea.hbm %s2380_s11, 64 }
 0x301   : > { %v492_v10 = vpack.c.bf16 %v485_v54, %v483_v6  ;;  %p1585_p3 = scmp.lt.s32.totalorder %s1583_s30, %s1579_s1 }
 0x302   : > { %v2082_v9 = vpop.eup %1377  ;;  %v870_v55 = vmul.f32 1.442695, %v820_v0  ;;  %v872_v58 = vmul.f32 1.442695, %v821_v5  ;;  %v491_v5 = vpack.c.bf16 %v484_v36, %v482_v35 }
 0x303   : > { %v2085_v59 = vpop.eup %1379  ;;  %598 = vmatpush.bf16.msra.mxu0 %v492_v10  ;;  %p1586_p4 = por %p1585_p3, %p1584_p2 }
 0x304   : > { %1385 = vpow2.f32 %v870_v55  ;;  %v922_v56 = vadd.f32 %v2085_v59, %v2082_v9  ;;  %v2090_v14 = vpop.eup %1381  ;;  %584 = vmatpush.bf16.msrb.mxu3 %v491_v5 }
 0x305   : > { %1387 = vpow2.f32 %v872_v58  ;;  %v2093_v16 = vpop.eup %1383  ;;  %v1254_v58 = vld [vmem:[%s2375_s6] sm:$0xff]  ;;  %s1057_s6 = scalar_lea.sflag [#allocation5], %s1939_s18  ;;  %p1587_p8 = pnand %p1586_p4, %p1582_p10 }
 0x306   : > { %923 = vadd.xlane.f32.xlu0 %v922_v56  ;;  %1389 = vpow2.f32 %v882_v11  ;;  %v928_v24 = vadd.f32 %v2093_v16, %v2090_v14  ;;  %v810_v56 = vsub.f32 %v2010_v46, %v768_v30  ;;  %1230 = vmatmul.msk.bf16.vlgmr.msra.gmra.mxu0 %vm502_vm0, %v1254_v58 }
 0x307   : > { %v774_v60 = vpop.xlane.xlu2 %773  ;;  %1391 = vpow2.f32 %v884_v57  ;;  %1229 = vmatmul.msk.bf16.vlgmr.msrb.gmra.mxu3 %vm502_vm0, %v1254_v58 }
 0x308   : > { %1393 = vpow2.f32 %v878_v63  ;;  %v814_v31 = vsub.f32 %v2018_v50, %v774_v60  ;;  %v815_v32 = vsub.f32 %v2020_v51, %v774_v60  ;;  %v850_v46 = vmul.f32 1.442695, %v810_v56 }
 0x309   : > { %1395 = vpow2.f32 %v880_v12  ;;  %v811_v12 = vsub.f32 %v2012_v47, %v768_v30 }
 0x30a   : > { %v2096_v17 = vpop.eup %1385  ;;  %1397 = vpow2.f32 %v886_v23  ;;  %v858_v0 = vmul.f32 1.442695, %v814_v31  ;;  %v860_v55 = vmul.f32 1.442695, %v815_v32 }
 0x30b   : > { %v2099_v21 = vpop.eup %1387  ;;  %1399 = vpow2.f32 %v888_v25  ;;  %v807_v25 = vsub.f32 %v2004_v43, %v762_v61 }
 0x30c   : > { %v925_v3 = vadd.f32 %v2099_v21, %v2096_v17  ;;  %v2106_v26 = vpop.eup %1389  ;;  %1401 = vpow2.f32 %v890_v4 }
 0x30d   : > { %v2108_v7 = vpop.eup %1391  ;;  %1403 = vpow2.f32 %v892_v27 }
 0x30e   : > { %929 = vadd.xlane.f32.xlu0 %v928_v24  ;;  %926 = vadd.xlane.f32.xlu2 %v925_v3  ;;  %v2110_v8 = vpop.eup %1393  ;;  %v934_v33 = vadd.f32 %v2108_v7, %v2106_v26  ;;  %1405 = vpow2.f32 %v858_v0  ;;  %v806_v24 = vsub.f32 %v2002_v42, %v762_v61 }
 0x30f   : > { %v777_v28 = vpop.xlane.xlu2 %776  ;;  %v2112_v29 = vpop.eup %1395  ;;  %1407 = vpow2.f32 %v860_v55 }
 0x310   : > { %v931_v34 = vadd.f32 %v2112_v29, %v2110_v8  ;;  %v2122_v37 = vpop.eup %1397  ;;  %v816_v13 = vsub.f32 %v2022_v52, %v777_v28  ;;  %v817_v20 = vsub.f32 %v2024_v53, %v777_v28  ;;  %v842_v31 = vmul.f32 1.442695, %v806_v24 }
 0x311   : > { %v2126_v50 = vpop.eup %1399 }
 0x312   : > { %v2131_v11 = vpop.eup %1401  ;;  %v937_v47 = vadd.f32 %v2126_v50, %v2122_v37  ;;  %v862_v52 = vmul.f32 1.442695, %v816_v13  ;;  %v864_v22 = vmul.f32 1.442695, %v817_v20 }
 0x313   : > { %v2136_v63 = vpop.eup %1403 }
 0x314   : > { %v2147_v53 = vpop.eup %1405 }
 0x315   : > { %v2150_v3 = vpop.eup %1407 }
 0x316   : > { %935 = vadd.xlane.f32.xlu0 %v934_v33  ;;  %932 = vadd.xlane.f32.xlu2 %v931_v34  ;;  %v916_v32 = vadd.f32 %v2150_v3, %v2147_v53  ;;  %v844_v33 = vmul.f32 1.442695, %v807_v25  ;;  %v756_v34 = vpop.xlane.xlu0 %755 }
 0x317   : > { %v801_v51 = vpop.xlane.xlu2 %800  ;;  %v803_v54 = vsub.f32 %v1996_v39, %v756_v34 }
 0x318   : > { %v832_v57 = vsub.f32 %v2066_v18, %v801_v51  ;;  %v833_v62 = vsub.f32 %v2068_v19, %v801_v51  ;;  %v940_v18 = vadd.f32 %v2136_v63, %v2131_v11  ;;  %v852_v19 = vmul.f32 1.442695, %v811_v12 }
 0x31a   : > { %v894_v60 = vmul.f32 1.442695, %v832_v57  ;;  %v896_v15 = vmul.f32 1.442695, %v833_v62  ;;  %v836_v57 = vmul.f32 1.442695, %v803_v54 }
 0x31c   : > { %1409 = vpow2.f32 %v894_v60 }
 0x31d   : > { %1411 = vpow2.f32 %v896_v15 }
 0x31e   : > { %941 = vadd.xlane.f32.xlu0 %v940_v18  ;;  %938 = vadd.xlane.f32.xlu2 %v937_v47  ;;  %1413 = vpow2.f32 %v850_v46 }
 0x31f   : > { %v771_v23 = vpop.xlane.xlu2 %770  ;;  %1415 = vpow2.f32 %v852_v19 }
 0x320   : > { %1417 = vpow2.f32 %v862_v52  ;;  %v812_v27 = vsub.f32 %v2014_v48, %v771_v23  ;;  %v813_v30 = vsub.f32 %v2016_v49, %v771_v23  ;;  %v802_v49 = vsub.f32 %v1994_v38, %v756_v34 }
 0x321   : > { %1419 = vpow2.f32 %v864_v22 }
 0x322   : > { %v2153_v4 = vpop.eup %1409  ;;  %v854_v35 = vmul.f32 1.442695, %v812_v27  ;;  %v856_v36 = vmul.f32 1.442695, %v813_v30  ;;  %1421 = vpow2.f32 %v842_v31  ;;  %v834_v58 = vmul.f32 1.442695, %v802_v49 }
 0x323   : > { %v2156_v28 = vpop.eup %1411  ;;  %1423 = vpow2.f32 %v844_v33  ;;  %v557_v27 = vld [vmem:[%s2376_s14] sm:$0xff]  ;;  %v558_v30 = vld [vmem:[%s2376_s14 + $0x8] sm:$0xff] }
 0x324   : > { %v943_v42 = vadd.f32 %v2156_v28, %v2153_v4  ;;  %v2163_v43 = vpop.eup %1413  ;;  %1425 = vpow2.f32 %v854_v35 }
 0x325   : > { %v2165_v48 = vpop.eup %1415  ;;  %1427 = vpow2.f32 %v856_v36 }
 0x326   : > { %917 = vadd.xlane.f32.xlu0 %v916_v32  ;;  %944 = vadd.xlane.f32.xlu2 %v943_v42  ;;  %v2167_v5 = vpop.eup %1417  ;;  %v910_v10 = vadd.f32 %v2165_v48, %v2163_v43  ;;  %1429 = vpow2.f32 %v834_v58 }
 0x327   : > { %v765_v0 = vpop.xlane.xlu2 %764  ;;  %v2170_v6 = vpop.eup %1419  ;;  %1431 = vpow2.f32 %v836_v57 }
 0x328   : > { %v808_v55 = vsub.f32 %v2006_v44, %v765_v0  ;;  %v809_v51 = vsub.f32 %v2008_v45, %v765_v0  ;;  %v919_v56 = vadd.f32 %v2170_v6, %v2167_v5  ;;  %v2179_v38 = vpop.eup %1421 }
 0x329   : > { %v2181_v39 = vpop.eup %1423 }
 0x32a   : > { %v846_v62 = vmul.f32 1.442695, %v808_v55  ;;  %v848_v12 = vmul.f32 1.442695, %v809_v51  ;;  %v2183_v13 = vpop.eup %1425  ;;  %v904_v61 = vadd.f32 %v2181_v39, %v2179_v38 }
 0x32b   : > { %v2185_v45 = vpop.eup %1427 }
 0x32c   : > { %1433 = vpow2.f32 %v846_v62  ;;  %v913_v20 = vadd.f32 %v2185_v45, %v2183_v13  ;;  %v2193_v46 = vpop.eup %1429 }
 0x32d   : > { %1435 = vpow2.f32 %v848_v12  ;;  %v2195_v47 = vpop.eup %1431 }
 0x32e   : > { %911 = vadd.xlane.f32.xlu0 %v910_v10  ;;  %920 = vadd.xlane.f32.xlu2 %v919_v56 }
 0x32f   : > { %v759_v44 = vpop.xlane.xlu2 %758 }
 0x330   : > { %v804_v60 = vsub.f32 %v1998_v40, %v759_v44  ;;  %v805_v15 = vsub.f32 %v2000_v41, %v759_v44  ;;  %v898_v41 = vadd.f32 %v2195_v47, %v2193_v46 }
 0x332   : > { %v838_v18 = vmul.f32 1.442695, %v804_v60  ;;  %v840_v19 = vmul.f32 1.442695, %v805_v15  ;;  %v2197_v52 = vpop.eup %1433 }
 0x333   : > { %v2199_v40 = vpop.eup %1435 }
 0x334   : > { %1437 = vpow2.f32 %v838_v18  ;;  %v907_v22 = vadd.f32 %v2199_v40, %v2197_v52 }
 0x335   : > { %1439 = vpow2.f32 %v840_v19 }
 0x336   : > { %905 = vadd.xlane.f32.xlu0 %v904_v61  ;;  %914 = vadd.xlane.f32.xlu2 %v913_v20 }
 0x33a   : > { %v2205_v23 = vpop.eup %1437 }
 0x33b   : > { %v2207_v24 = vpop.eup %1439 }
 0x33c   : > { %v901_v25 = vadd.f32 %v2207_v24, %v2205_v23 }
 0x33e   : > { %899 = vadd.xlane.f32.xlu0 %v898_v41  ;;  %908 = vadd.xlane.f32.xlu2 %v907_v22 }
 0x346   : > { %902 = vadd.xlane.f32.xlu2 %v901_v25 }
 0x352   : > { %561 = vperm.xlu0 %1375, %v557_v27  }
 0x35e   : > { %566 = vperm.xlu2 %1376, %v558_v30  }
 0x379   : > { %v924_v31 = vpop.xlane.xlu0 %923 }
 0x381   : > { %v930_v32 = vpop.xlane.xlu0 %929  ;;  %v927_v42 = vpop.xlane.xlu2 %926 }
 0x389   : > { %v933_v33 = vpop.xlane.xlu2 %932  ;;  %v936_v34 = vpop.xlane.xlu0 %935 }
 0x391   : > { %v939_v35 = vpop.xlane.xlu2 %938  ;;  %v942_v36 = vpop.xlane.xlu0 %941 }
 0x392   : > { %1441 = vrcp.f32 %v942_v36 }
 0x398   : > { %v1442_v54 = vpop.eup %1441 }
 0x399   : > { %v945_v0 = vpop.xlane.xlu2 %944  ;;  %v918_v49 = vpop.xlane.xlu0 %917  ;;  %v990_v58 = vmul.f32 %v1442_v54, %v2131_v11  ;;  %v991_v10 = vmul.f32 %v1442_v54, %v2136_v63 }
 0x39a   : > { %1443 = vrcp.f32 %v945_v0 }
 0x39b   : > { %1445 = vrcp.f32 %v939_v35 }
 0x39c   : > { %1447 = vrcp.f32 %v936_v34  ;;  %v600_v34 = vpop.f32.mrf.mxu0 }
 0x39d   : > { %1449 = vrcp.f32 %v933_v33  ;;  %v586_v33 = vpop.f32.mrf.mxu3 }
 0x39e   : > { %1451 = vrcp.f32 %v930_v32 }
 0x39f   : > { %1453 = vrcp.f32 %v927_v42 }
 0x3a0   : > { %v1444_v55 = vpop.eup %1443  ;;  %1455 = vrcp.f32 %v924_v31 }
 0x3a1   : > { %v921_v51 = vpop.xlane.xlu2 %920  ;;  %v992_v56 = vmul.f32 %v1444_v55, %v2153_v4  ;;  %v993_v57 = vmul.f32 %v1444_v55, %v2156_v28  ;;  %v1446_v44 = vpop.eup %1445 }
 0x3a2   : > { %v1448_v60 = vpop.eup %1447  ;;  %v912_v15 = vpop.xlane.xlu0 %911  ;;  %v988_v61 = vmul.f32 %v1446_v44, %v2122_v37  ;;  %v989_v20 = vmul.f32 %v1446_v44, %v2126_v50  ;;  %1457 = vrcp.f32 %v921_v51 }
 0x3a3   : > { %v1016_v62 = vpack.c.bf16 %v992_v56, %v990_v58  ;;  %v1017_v12 = vpack.c.bf16 %v993_v57, %v991_v10  ;;  %v986_v63 = vmul.f32 %v1448_v60, %v2106_v26  ;;  %v987_v4 = vmul.f32 %v1448_v60, %v2108_v7  ;;  %v1450_v19 = vpop.eup %1449 }
 0x3a4   : > { %v1452_v41 = vpop.eup %1451  ;;  %v984_v22 = vmul.f32 %v1450_v19, %v2110_v8  ;;  %v985_v25 = vmul.f32 %v1450_v19, %v2112_v29  ;;  %1459 = vrcp.f32 %v918_v49  ;;  %v602_v51 = vpop.f32.mrf.mxu0 }
 0x3a5   : > { %1018 = vmatpush.bf16.xpose.msra.mxu3 %v1016_v62  ;;  %1032 = vmatpush.bf16.xpose.msrb.mxu0 %v1017_v12  ;;  %v1014_v18 = vpack.c.bf16 %v988_v61, %v986_v63  ;;  %v1015_v28 = vpack.c.bf16 %v989_v20, %v987_v4  ;;  %v982_v27 = vmul.f32 %v1452_v41, %v2090_v14  ;;  %v1454_v32 = vpop.eup %1453  ;;  %v588_v58 = vpop.f32.mrf.mxu3 }
 0x3a6   : > { %v983_v26 = vmul.f32 %v1452_v41, %v2093_v16  ;;  %v1456_v35 = vpop.eup %1455  ;;  %v980_v8 = vmul.f32 %v1454_v32, %v2096_v17  ;;  %v981_v29 = vmul.f32 %v1454_v32, %v2099_v21  ;;  %v1049_v32 = vstv %s1048_s13 }
 0x3a7   : > { %v1012_v30 = vpack.c.bf16 %v984_v22, %v982_v27  ;;  %v978_v42 = vmul.f32 %v1456_v35, %v2082_v9  ;;  %v979_v14 = vmul.f32 %v1456_v35, %v2085_v59 }
 0x3a8   : > { %v1013_v7 = vpack.c.bf16 %v985_v25, %v983_v26  ;;  %v1458_v54 = vpop.eup %1457 }
 0x3a9   : > { %v915_v11 = vpop.xlane.xlu2 %914  ;;  %v1010_v36 = vpack.c.bf16 %v980_v8, %v978_v42  ;;  %v1011_v0 = vpack.c.bf16 %v981_v29, %v979_v14  ;;  %v976_v17 = vmul.f32 %v1458_v54, %v2167_v5  ;;  %v977_v21 = vmul.f32 %v1458_v54, %v2170_v6 }
 0x3aa   : > { %v906_v50 = vpop.xlane.xlu0 %905  ;;  %v1460_v55 = vpop.eup %1459  ;;  %1461 = vrcp.f32 %v915_v11 }
 0x3ab   : > { %1463 = vrcp.f32 %v912_v15  ;;  %v974_v59 = vmul.f32 %v1460_v55, %v2147_v53  ;;  %v975_v56 = vmul.f32 %v1460_v55, %v2150_v3 }
 0x3ad   : > { %1019 = vmatpush.bf16.xpose.msra.mxu3 %v1014_v18  ;;  %1033 = vmatpush.bf16.xpose.msrb.mxu0 %v1015_v28  ;;  %v1008_v62 = vpack.c.bf16 %v976_v17, %v974_v59  ;;  %v1009_v12 = vpack.c.bf16 %v977_v21, %v975_v56 }
 0x3b0   : > { %v1462_v60 = vpop.eup %1461 }
 0x3b1   : > { %v909_v37 = vpop.xlane.xlu2 %908  ;;  %v1464_v5 = vpop.eup %1463  ;;  %v972_v15 = vmul.f32 %v1462_v60, %v2183_v13  ;;  %v973_v11 = vmul.f32 %v1462_v60, %v2185_v45 }
 0x3b2   : > { %v900_v16 = vpop.xlane.xlu0 %899  ;;  %1465 = vrcp.f32 %v909_v37  ;;  %v970_v53 = vmul.f32 %v1464_v5, %v2163_v43  ;;  %v971_v3 = vmul.f32 %v1464_v5, %v2165_v48 }
 0x3b3   : > { %1467 = vrcp.f32 %v906_v50 }
 0x3b4   : > { %v1006_v63 = vpack.c.bf16 %v972_v15, %v970_v53  ;;  %v1007_v4 = vpack.c.bf16 %v973_v11, %v971_v3 }
 0x3b5   : > { %1020 = vmatpush.bf16.xpose.msra.mxu3 %v1012_v30  ;;  %1034 = vmatpush.bf16.xpose.msrb.mxu0 %v1013_v7 }
 0x3b8   : > { %v1466_v18 = vpop.eup %1465 }
 0x3b9   : > { %v903_v31 = vpop.xlane.xlu2 %902  ;;  %v1468_v28 = vpop.eup %1467  ;;  %v968_v19 = vmul.f32 %v1466_v18, %v2197_v52  ;;  %v969_v41 = vmul.f32 %v1466_v18, %v2199_v40 }
 0x3ba   : > { %1469 = vrcp.f32 %v903_v31  ;;  %v966_v13 = vmul.f32 %v1468_v28, %v2179_v38  ;;  %v967_v45 = vmul.f32 %v1468_v28, %v2181_v39 }
 0x3bb   : > { %1471 = vrcp.f32 %v900_v16 }
 0x3bc   : > { %v1004_v22 = vpack.c.bf16 %v968_v19, %v966_v13  ;;  %v1005_v43 = vpack.c.bf16 %v969_v41, %v967_v45 }
 0x3bd   : > { %1021 = vmatpush.bf16.xpose.msra.mxu3 %v1010_v36  ;;  %1035 = vmatpush.bf16.xpose.msrb.mxu0 %v1011_v0 }
 0x3c0   : > { %v1470_v25 = vpop.eup %1469 }
 0x3c1   : > { %v567_v49 = vpop.permute.xlu2 %566  ;;  %v1472_v48 = vpop.eup %1471  ;;  %v964_v37 = vmul.f32 %v1470_v25, %v2205_v23  ;;  %v965_v50 = vmul.f32 %v1470_v25, %v2207_v24 }
 0x3c2   : > { %v589_v10 = vadd.f32 %v588_v58, %v567_v49  ;;  %v603_v9 = vadd.f32 %v602_v51, %v567_v49  ;;  %v962_v52 = vmul.f32 %v1472_v48, %v2193_v46  ;;  %v963_v40 = vmul.f32 %v1472_v48, %v2195_v47 }
 0x3c4   : > { %v562_v57 = vpop.permute.xlu0 %561  ;;  %v997_v44 = vadd.f32 %v603_v9, %v589_v10  ;;  %v1002_v27 = vpack.c.bf16 %v964_v37, %v962_v52  ;;  %v1003_v38 = vpack.c.bf16 %v965_v50, %v963_v40 }
 0x3c5   : > { %v587_v61 = vadd.f32 %v586_v33, %v562_v57  ;;  %v601_v20 = vadd.f32 %v600_v34, %v562_v57  ;;  %1022 = vmatpush.bf16.xpose.msra.mxu3 %v1008_v62  ;;  %1036 = vmatpush.bf16.xpose.msrb.mxu0 %v1009_v12 }
 0x3c6   : > { %998 = vadd.xlane.f32.xlu2 %v997_v44 }
 0x3c7   : > { %v994_v6 = vadd.f32 %v601_v20, %v587_v61  ;;  %v1000_v39 = vpack.c.bf16 %v589_v10, %v587_v61  ;;  %v1001_v26 = vpack.c.bf16 %v603_v9, %v601_v20 }
 0x3c9   : > { %995 = vadd.xlane.f32.xlu0 %v994_v6 }
 0x3cd   : > { %1023 = vmatpush.bf16.xpose.msra.mxu3 %v1006_v63  ;;  %1037 = vmatpush.bf16.xpose.msrb.mxu0 %v1007_v4 }
 0x3d5   : > { %1024 = vmatpush.bf16.xpose.msra.mxu3 %v1004_v22  ;;  %1038 = vmatpush.bf16.xpose.msrb.mxu0 %v1005_v43 }
 0x3dd   : > { %1025 = vmatpush.bf16.xpose.msra.mxu3 %v1002_v27  ;;  %1039 = vmatpush.bf16.xpose.msrb.mxu0 %v1003_v38 }
 0x3e4   : > { %1026 = vmatmul.bf16.vlgmr.msra.gmra.mxu3 %v1000_v39  ;;  %1040 = vmatmul.bf16.vlgmr.msrb.gmra.mxu0 %v1001_v26 }
 0x439   : > { %v999_v29 = vpop.xlane.xlu2 %998 }
 0x43c   : > { %v996_v24 = vpop.xlane.xlu0 %995 }
 0x461   : > { %v1041_v30 = vpop.f32.mrf.mxu0 }
 0x467   : > { %v1027_v7 = vpop.f32.mrf.mxu3 }
 0x468   : > { %v1042_v23 = vadd.f32 %v1041_v30, %v1027_v7 }
 0x469   : > { %v1043_v34 = vpop.f32.mrf.mxu0 }
 0x46a   : > { %v1046_v46 = vsub.f32 %v996_v24, %v1042_v23 }
 0x46c   : > { %v1050_v47 = vmul.f32 %v1049_v32, %v1046_v46 }
 0x46e   : > { %v1052_v33 = vadd.f32 %v1050_v47, %v1957_v1 }
 0x46f   : > { %v1029_v35 = vpop.f32.mrf.mxu3 }
 0x470   : > { %1054 = vst [vmem:[%s478_s27] sm:$0xff] %v1052_v33  ;;  %v1044_v8 = vadd.f32 %v1043_v34, %v1029_v35 }
 0x472   : > { %v1047_v31 = vsub.f32 %v999_v29, %v1044_v8 }
 0x474   : > { %v1051_v42 = vmul.f32 %v1049_v32, %v1047_v31 }
 0x476   : > { %v1053_v1 = vadd.f32 %v1051_v42, %v1959_v2 }
 0x478   : > { %1055 = vst [vmem:[%s478_s27 + $0x8] sm:$0xff] %v1053_v1 }
 0x479   : > { %1590 = shalt.err (!%p1587_p8)
}
 0x47a   : > { %s1696_s18 = smov 128   ;;  %s1697_s13 = smov 256  }
 0x47b   : > { %s1698_s12 = smov 8  }
 0x47c   : > { %1261 = dma.vmem_to_hbm [thread:$0]  (%p1896_p9), %s1071_s29, 256, %s1073_s4, %s1057_s6, %s1696_s18, %s1697_s13, %s1698_s12  }
 0x47d PF: > { %s2382_s8 = sld [smem:[#allocation14_spill]]  ;;  %p1278_p11 = scmp.ge.s32.totalorder %s1689_s24, 2 }
 0x47f   : > { %p1274_p0 = pnand %p1278_p11, %p1902_p5 }
 0x481   : > { %p1275_p1 = pneg %p1274_p0 }
 0x483   : > { %s1087_s27 = sand.u32 1, %s2382_s8  }
 0x484   : > { %s1088_s2 = scalar_lea.sflag [#allocation5], %s1087_s27 }
 0x485   : > { %1644 = dma.done.wait (%p1275_p1), %s1088_s2, 256  }
 0x486   : > { %1646 = vsyncadd (%p1275_p1), %s1088_s2, 4294967040  ;;  %s30_s24 = sadd.s32 1, %s1689_s24   ;;  %s2384_s7 = sld [smem:[#allocation13_spill]] }
 0x487   : > { %p27_p12 = scmp.ge.s32.totalorder %s30_s24, 6   ;;  %s2385_s17 = sld [smem:[#allocation23_spill]] }
 0x488   : > { %s2386_s5 = sld [smem:[#allocation19_spill]]  ;;  %s2388_s15 = smov %s1653_s16 }
 0x489   : > { %s2387_s3 = sld [smem:[#allocation21_spill]]  ;;  %s2390_s18 = smov %s1665_s19 }
 0x48a   : > { %s2391_s19 = smov %s1669_s20  ;;  %s2392_s20 = smov %s1915_s26 }
 0x48b   : > { %s2393_s21 = smov %s1681_s22  ;;  %s2394_s9 = smov %s1685_s23 }
 0x48c   : > { %s2389_s16 = smov %s2384_s7  ;;  %29 = sbr.rel (!%p27_p12) target bundleno = 22 (0x16), region = 129 }
 0x48e   : > { %s2395_s22 = smov %s2386_s5 }
 0x48f   : > { %s2396_s23 = smov %s2387_s3 }
 0x491   :  { %1094 = vsyncpa [#allocation4], 1 }
 0x492   :  { %1096 = vsyncpa [#allocation4 + $0x1], 1 }
 0x493   :  { %1097 = vsyncpa [#allocation7], 1 }
 0x494   :  { %1099 = vsyncpa [#allocation7 + $0x1], 1 }
 0x495   :  { %1100 = vsyncpa [#allocation5], 1 }
 0x496   :  { %1102 = vsyncpa [#allocation5 + $0x1], 1 }

</bundles_post_ra>
